<compile_context>
chip_gen: v6e
topology: v6e:2x2x1
jax: 0.10.0
libtpu: 0.0.40
codegen_flags: <defaults>
</compile_context>

<pallas_src>
import jax
import jax.numpy as jnp
from jax.experimental import pallas as pl
from jax.experimental.pallas import tpu as pltpu


LANE = 128
SUBLANE = 8


def _round_up(x, m):
    return (x + m - 1) // m * m


def _layernorm(x, gamma, beta, eps=1e-5):
    # PyTorch LayerNorm over last dim (biased variance), single-pass form:
    # var = E[x^2] - mean^2; rsqrt goes to the EUP.
    mean = jnp.mean(x, axis=-1, keepdims=True)
    mean_sq = jnp.mean(x * x, axis=-1, keepdims=True)
    var = mean_sq - mean * mean
    inv = jax.lax.rsqrt(var + eps)
    return (x - mean) * inv * gamma + beta


def _silu(x):
    return x * jax.nn.sigmoid(x)


def multitask_moco_kernel(
    lc_ref, sp_ref,                       # (TB, D_lc) / (TB, D_sp), bf16
    wqlc_ref, wqsp_ref, bq_ref,           # encoder -> q (cols padded to F_pad)
    w1_ref, b1_ref, g1_ref, be1_ref,      # input_layer (rows padded) + norm1
    w2_ref, b2_ref, g2_ref, be2_ref,      # hidden_layer + norm2
    w3_ref, b3_ref,                       # output_layer (cols padded to O_pad)
    q_ref, preds_ref,                     # (TB, F_pad) / (TB, O_pad), f32
):
    # --- moco_model stand-in: split contraction (no concat materialization) ---
    q = (
        jnp.dot(lc_ref[...], wqlc_ref[...], preferred_element_type=jnp.float32)
        + jnp.dot(sp_ref[...], wqsp_ref[...], preferred_element_type=jnp.float32)
        + bq_ref[...]
    )
    q_ref[...] = q.astype(q_ref.dtype)    # lane-dense (128-wide) unmasked store

    # --- Predictor: Linear -> LN -> SiLU -> Linear -> LN -> SiLU -> Linear ---
    h = jnp.dot(q.astype(jnp.bfloat16), w1_ref[...],
                preferred_element_type=jnp.float32) + b1_ref[...]
    h = _silu(_layernorm(h, g1_ref[...], be1_ref[...]))
    h = jnp.dot(h.astype(jnp.bfloat16), w2_ref[...],
                preferred_element_type=jnp.float32) + b2_ref[...]
    h = _silu(_layernorm(h, g2_ref[...], be2_ref[...]))
    preds = jnp.dot(h.astype(jnp.bfloat16), w3_ref[...],
                    preferred_element_type=jnp.float32) + b3_ref[...]
    preds_ref[...] = preds.astype(preds_ref.dtype)   # lane-dense store


@jax.jit
def multitask_moco_forward(lightcurves, spectra, params):
    (wq, bq, w1, b1, g1, be1, w2, b2, g2, be2, w3, b3) = params

    B = lightcurves.shape[0]
    lc = lightcurves.reshape(B, -1)
    sp = spectra.reshape(B, -1)
    D_lc, D_sp = lc.shape[1], sp.shape[1]
    F = wq.shape[1]
    H = w1.shape[1]
    O = w3.shape[1]

    F_pad = _round_up(F, LANE)
    O_pad = _round_up(O, LANE)

    # Batch tile: multiple of 8 sublanes, capped at 128 rows per grid step.
    TB = min(_round_up(B, SUBLANE), 128)
    B_pad = _round_up(B, TB)

    # Pad batch with zero rows (discarded on slice-back); bf16 for the MXU.
    if B_pad != B:
        lc = jnp.pad(lc, ((0, B_pad - B), (0, 0)))
        sp = jnp.pad(sp, ((0, B_pad - B), (0, 0)))
    lc = lc.astype(jnp.bfloat16)
    sp = sp.astype(jnp.bfloat16)

    # Split encoder weight for the split contraction; zero-pad feature/output
    # columns so kernel outputs are lane-dense (padding columns are exactly 0,
    # and LayerNorm runs over H which is untouched, so numerics are unchanged).
    wq_lc = jnp.pad(wq[:D_lc], ((0, 0), (0, F_pad - F))).astype(jnp.bfloat16)
    wq_sp = jnp.pad(wq[D_lc:], ((0, 0), (0, F_pad - F))).astype(jnp.bfloat16)
    bq_p = jnp.pad(bq, ((0, 0), (0, F_pad - F)))
    w1_p = jnp.pad(w1, ((0, F_pad - F), (0, 0))).astype(jnp.bfloat16)
    w2_b = w2.astype(jnp.bfloat16)
    w3_p = jnp.pad(w3, ((0, 0), (0, O_pad - O))).astype(jnp.bfloat16)
    b3_p = jnp.pad(b3, ((0, 0), (0, O_pad - O)))

    def row_spec(d):
        # Batch-tiled activations / outputs.
        return pl.BlockSpec((TB, d), lambda i: (i, 0))

    def resident_spec(shape):
        # Weights stay resident across all grid steps (constant block index).
        return pl.BlockSpec(shape, lambda i: tuple(0 for _ in shape))

    in_arrays = (lc, sp, wq_lc, wq_sp, bq_p,
                 w1_p, b1, g1, be1, w2_b, b2, g2, be2, w3_p, b3_p)
    in_specs = [row_spec(D_lc), row_spec(D_sp)] + [
        resident_spec(a.shape) for a in in_arrays[2:]
    ]

    flops = 2 * B_pad * (D_lc * F_pad + D_sp * F_pad
                         + F_pad * H + H * H + H * O_pad)
    transcendentals = B_pad * (4 * H + 2)           # 2x SiLU sigmoid + 2x rsqrt
    bytes_accessed = (sum(int(a.size) * a.dtype.itemsize for a in in_arrays)
                      + B_pad * (F_pad + O_pad) * 4)

    q_pad, preds_pad = pl.pallas_call(
        multitask_moco_kernel,
        grid=(B_pad // TB,),
        in_specs=in_specs,
        out_specs=(row_spec(F_pad), row_spec(O_pad)),
        out_shape=(
            jax.ShapeDtypeStruct((B_pad, F_pad), jnp.float32),
            jax.ShapeDtypeStruct((B_pad, O_pad), jnp.float32),
        ),
        compiler_params=pltpu.CompilerParams(
            dimension_semantics=("parallel",),      # v7x: shard batch over 2 TCs
        ),
        cost_estimate=pl.CostEstimate(
            flops=int(flops),
            transcendentals=int(transcendentals),
            bytes_accessed=int(bytes_accessed),
        ),
    )(*in_arrays)

    # moco_out dict with 'preds' attached — mirrors MultiTaskMoCo.forward.
    return {"q": q_pad[:B, :F], "preds": preds_pad[:B, :O]}


def init_params(key, d_in, feat_dim, hidden_dim, out_dim):
    """PyTorch-style init: Linear ~ U(-1/sqrt(fan_in), +), LN gamma=1, beta=0.
    Weights stored (in, out); biases (1, out)."""
    ks = jax.random.split(key, 8)

    def lin(kw, kb, fan_in, fan_out):
        bound = 1.0 / jnp.sqrt(fan_in)
        w = jax.random.uniform(kw, (fan_in, fan_out), jnp.float32, -bound, bound)
        b = jax.random.uniform(kb, (1, fan_out), jnp.float32, -bound, bound)
        return w, b

    wq, bq = lin(ks[0], ks[1], d_in, feat_dim)          # encoder stand-in
    w1, b1 = lin(ks[2], ks[3], feat_dim, hidden_dim)    # input_layer
    g1 = jnp.ones((1, hidden_dim), jnp.float32)
    be1 = jnp.zeros((1, hidden_dim), jnp.float32)
    w2, b2 = lin(ks[4], ks[5], hidden_dim, hidden_dim)  # hidden_layer
    g2 = jnp.ones((1, hidden_dim), jnp.float32)
    be2 = jnp.zeros((1, hidden_dim), jnp.float32)
    w3, b3 = lin(ks[6], ks[7], hidden_dim, out_dim)     # output_layer
    return (wq, bq, w1, b1, g1, be1, w2, b2, g2, be2, w3, b3)


def _reference_forward(lightcurves, spectra, params):
    """Pure-JAX reference with identical numerics (bf16 matmuls, f32 acc)."""
    (wq, bq, w1, b1, g1, be1, w2, b2, g2, be2, w3, b3) = params
    B = lightcurves.shape[0]
    lc = lightcurves.reshape(B, -1)
    sp = spectra.reshape(B, -1)
    D_lc = lc.shape[1]
    bf, f32 = jnp.bfloat16, jnp.float32
    q = (jnp.dot(lc.astype(bf), wq[:D_lc].astype(bf), preferred_element_type=f32)
         + jnp.dot(sp.astype(bf), wq[D_lc:].astype(bf), preferred_element_type=f32)
         + bq)
    h = jnp.dot(q.astype(bf), w1.astype(bf), preferred_element_type=f32) + b1
    h = _silu(_layernorm(h, g1, be1))
    h = jnp.dot(h.astype(bf), w2.astype(bf), preferred_element_type=f32) + b2
    h = _silu(_layernorm(h, g2, be2))
    preds = jnp.dot(h.astype(bf), w3.astype(bf), preferred_element_type=f32) + b3
    return {"q": q, "preds": preds}


if __name__ == "__main__":
    key = jax.random.PRNGKey(0)
    k_lc, k_sp, k_p = jax.random.split(key, 3)

    # Small shapes: batch=8, 1-channel light curve of length 256,
    # 1-channel spectrum of length 128; feature dim 64, hidden 128, out 8.
    B, C = 8, 1
    T_LC, T_SP = 256, 128
    FEAT, HIDDEN, OUT = 64, 128, 8

    lightcurves = jax.random.normal(k_lc, (B, C, T_LC), jnp.float32)
    spectra = jax.random.normal(k_sp, (B, C, T_SP), jnp.float32)

    params = init_params(k_p, C * T_LC + C * T_SP, FEAT, HIDDEN, OUT)

    out = multitask_moco_forward(lightcurves, spectra, params)
    jax.block_until_ready(out)

    ref = _reference_forward(lightcurves, spectra, params)
    assert out["q"].shape == (B, FEAT) and out["preds"].shape == (B, OUT)
    assert jnp.allclose(out["q"], ref["q"], atol=2e-3, rtol=2e-3)
    assert jnp.allclose(out["preds"], ref["preds"], atol=2e-3, rtol=2e-3)

    print("KERNEL_OK")
</pallas_src>

<mosaic_0001>
module attributes {stable_mosaic.version = 11 : i64} {
  func.func @multitask_moco_kernel(%arg0: i32, %arg1: memref<8x256xbf16, #tpu.memory_space<vmem>>, %arg2: memref<8x128xbf16, #tpu.memory_space<vmem>>, %arg3: memref<256x128xbf16, #tpu.memory_space<vmem>>, %arg4: memref<128x128xbf16, #tpu.memory_space<vmem>>, %arg5: memref<1x128xf32, #tpu.memory_space<vmem>>, %arg6: memref<128x128xbf16, #tpu.memory_space<vmem>>, %arg7: memref<1x128xf32, #tpu.memory_space<vmem>>, %arg8: memref<1x128xf32, #tpu.memory_space<vmem>>, %arg9: memref<1x128xf32, #tpu.memory_space<vmem>>, %arg10: memref<128x128xbf16, #tpu.memory_space<vmem>>, %arg11: memref<1x128xf32, #tpu.memory_space<vmem>>, %arg12: memref<1x128xf32, #tpu.memory_space<vmem>>, %arg13: memref<1x128xf32, #tpu.memory_space<vmem>>, %arg14: memref<128x128xbf16, #tpu.memory_space<vmem>>, %arg15: memref<1x128xf32, #tpu.memory_space<vmem>>, %arg16: memref<8x128xf32, #tpu.memory_space<vmem>>, %arg17: memref<8x128xf32, #tpu.memory_space<vmem>>) attributes {dimension_semantics = [#tpu.dimension_semantics<parallel>], iteration_bounds = array<i64: 1>, scalar_prefetch = 0 : i64, scratch_operands = 0 : i64, tpu.core_type = #tpu.core_type<tc>, window_params = [{transform_indices = @transform_0, window_bounds = array<i64: 8, 256>}, {transform_indices = @transform_1, window_bounds = array<i64: 8, 128>}, {pipeline_mode = #tpu.pipeline_mode<synchronous>, transform_indices = @transform_2, window_bounds = array<i64: 256, 128>}, {pipeline_mode = #tpu.pipeline_mode<synchronous>, transform_indices = @transform_3, window_bounds = array<i64: 128, 128>}, {pipeline_mode = #tpu.pipeline_mode<synchronous>, transform_indices = @transform_4, window_bounds = array<i64: 1, 128>}, {pipeline_mode = #tpu.pipeline_mode<synchronous>, transform_indices = @transform_5, window_bounds = array<i64: 128, 128>}, {pipeline_mode = #tpu.pipeline_mode<synchronous>, transform_indices = @transform_6, window_bounds = array<i64: 1, 128>}, {pipeline_mode = #tpu.pipeline_mode<synchronous>, transform_indices = @transform_7, window_bounds = array<i64: 1, 128>}, {pipeline_mode = #tpu.pipeline_mode<synchronous>, transform_indices = @transform_8, window_bounds = array<i64: 1, 128>}, {pipeline_mode = #tpu.pipeline_mode<synchronous>, transform_indices = @transform_9, window_bounds = array<i64: 128, 128>}, {pipeline_mode = #tpu.pipeline_mode<synchronous>, transform_indices = @transform_10, window_bounds = array<i64: 1, 128>}, {pipeline_mode = #tpu.pipeline_mode<synchronous>, transform_indices = @transform_11, window_bounds = array<i64: 1, 128>}, {pipeline_mode = #tpu.pipeline_mode<synchronous>, transform_indices = @transform_12, window_bounds = array<i64: 1, 128>}, {pipeline_mode = #tpu.pipeline_mode<synchronous>, transform_indices = @transform_13, window_bounds = array<i64: 128, 128>}, {pipeline_mode = #tpu.pipeline_mode<synchronous>, transform_indices = @transform_14, window_bounds = array<i64: 1, 128>}, {transform_indices = @transform_15, window_bounds = array<i64: 8, 128>}, {transform_indices = @transform_16, window_bounds = array<i64: 8, 128>}]} {
    %c0 = arith.constant 0 : index
    %c0_0 = arith.constant 0 : index
    %0 = vector.load %arg1[%c0, %c0_0] : memref<8x256xbf16, #tpu.memory_space<vmem>>, vector<8x256xbf16>
    %c0_1 = arith.constant 0 : index
    %c0_2 = arith.constant 0 : index
    %1 = vector.load %arg3[%c0_1, %c0_2] : memref<256x128xbf16, #tpu.memory_space<vmem>>, vector<256x128xbf16>
    %cst = arith.constant dense<0.000000e+00> : vector<8x128xf32>
    %2 = tpu.matmul %0, %1, %cst {dimension_numbers = #tpu.dot_dimension_numbers<[1], [0], [0], [1], [0, 0, 1, 1], [], []>} : vector<8x256xbf16>, vector<256x128xbf16>, vector<8x128xf32> -> vector<8x128xf32>
    %c0_3 = arith.constant 0 : index
    %c0_4 = arith.constant 0 : index
    %3 = vector.load %arg2[%c0_3, %c0_4] : memref<8x128xbf16, #tpu.memory_space<vmem>>, vector<8x128xbf16>
    %c0_5 = arith.constant 0 : index
    %c0_6 = arith.constant 0 : index
    %4 = vector.load %arg4[%c0_5, %c0_6] : memref<128x128xbf16, #tpu.memory_space<vmem>>, vector<128x128xbf16>
    %cst_7 = arith.constant dense<0.000000e+00> : vector<8x128xf32>
    %5 = tpu.matmul %3, %4, %cst_7 {dimension_numbers = #tpu.dot_dimension_numbers<[1], [0], [0], [1], [0, 0, 1, 1], [], []>} : vector<8x128xbf16>, vector<128x128xbf16>, vector<8x128xf32> -> vector<8x128xf32>
    %6 = arith.addf %2, %5 : vector<8x128xf32>
    %c0_8 = arith.constant 0 : index
    %c0_9 = arith.constant 0 : index
    %7 = vector.load %arg5[%c0_8, %c0_9] : memref<1x128xf32, #tpu.memory_space<vmem>>, vector<1x128xf32>
    %8 = vector.broadcast %7 : vector<1x128xf32> to vector<8x128xf32>
    %9 = arith.addf %6, %8 : vector<8x128xf32>
    %c0_10 = arith.constant 0 : index
    %c0_11 = arith.constant 0 : index
    %10 = vector.load %arg16[%c0_10, %c0_11] : memref<8x128xf32, #tpu.memory_space<vmem>>, vector<8x128xf32>
    tpu.vector_store %arg16[%c0_10, %c0_11], %9 {strides = array<i32>} : memref<8x128xf32, #tpu.memory_space<vmem>>, vector<8x128xf32>,
    %11 = arith.truncf %9 : vector<8x128xf32> to vector<8x128xbf16>
    %c0_12 = arith.constant 0 : index
    %c0_13 = arith.constant 0 : index
    %12 = vector.load %arg6[%c0_12, %c0_13] : memref<128x128xbf16, #tpu.memory_space<vmem>>, vector<128x128xbf16>
    %cst_14 = arith.constant dense<0.000000e+00> : vector<8x128xf32>
    %13 = tpu.matmul %11, %12, %cst_14 {dimension_numbers = #tpu.dot_dimension_numbers<[1], [0], [0], [1], [0, 0, 1, 1], [], []>} : vector<8x128xbf16>, vector<128x128xbf16>, vector<8x128xf32> -> vector<8x128xf32>
    %c0_15 = arith.constant 0 : index
    %c0_16 = arith.constant 0 : index
    %14 = vector.load %arg7[%c0_15, %c0_16] : memref<1x128xf32, #tpu.memory_space<vmem>>, vector<1x128xf32>
    %15 = vector.broadcast %14 : vector<1x128xf32> to vector<8x128xf32>
    %16 = arith.addf %13, %15 : vector<8x128xf32>
    %c0_17 = arith.constant 0 : index
    %c0_18 = arith.constant 0 : index
    %17 = vector.load %arg8[%c0_17, %c0_18] : memref<1x128xf32, #tpu.memory_space<vmem>>, vector<1x128xf32>
    %c0_19 = arith.constant 0 : index
    %c0_20 = arith.constant 0 : index
    %18 = vector.load %arg9[%c0_19, %c0_20] : memref<1x128xf32, #tpu.memory_space<vmem>>, vector<1x128xf32>
    %cst_21 = arith.constant dense<0.000000e+00> : vector<8xf32>
    %19 = vector.multi_reduction <add>, %16, %cst_21 [1] : vector<8x128xf32> to vector<8xf32>
    %20 = vector.shape_cast %19 : vector<8xf32> to vector<8x1xf32>
    %cst_22 = arith.constant 1.280000e+02 : f32
    %21 = vector.broadcast %cst_22 : f32 to vector<8x1xf32>
    %22 = arith.divf %20, %21 : vector<8x1xf32>
    %23 = arith.mulf %16, %16 : vector<8x128xf32>
    %cst_23 = arith.constant dense<0.000000e+00> : vector<8xf32>
    %24 = vector.multi_reduction <add>, %23, %cst_23 [1] : vector<8x128xf32> to vector<8xf32>
    %25 = vector.shape_cast %24 : vector<8xf32> to vector<8x1xf32>
    %cst_24 = arith.constant 1.280000e+02 : f32
    %26 = vector.broadcast %cst_24 : f32 to vector<8x1xf32>
    %27 = arith.divf %25, %26 : vector<8x1xf32>
    %28 = arith.mulf %22, %22 : vector<8x1xf32>
    %29 = arith.subf %27, %28 : vector<8x1xf32>
    %cst_25 = arith.constant 9.99999974E-6 : f32
    %30 = vector.broadcast %cst_25 : f32 to vector<8x1xf32>
    %31 = arith.addf %29, %30 : vector<8x1xf32>
    %32 = math.rsqrt %31 : vector<8x1xf32>
    %33 = vector.broadcast %22 : vector<8x1xf32> to vector<8x128xf32>
    %34 = arith.subf %16, %33 : vector<8x128xf32>
    %35 = vector.broadcast %32 : vector<8x1xf32> to vector<8x128xf32>
    %36 = arith.mulf %34, %35 : vector<8x128xf32>
    %37 = vector.broadcast %17 : vector<1x128xf32> to vector<8x128xf32>
    %38 = arith.mulf %36, %37 : vector<8x128xf32>
    %39 = vector.broadcast %18 : vector<1x128xf32> to vector<8x128xf32>
    %40 = arith.addf %38, %39 : vector<8x128xf32>
    %41 = arith.negf %40 : vector<8x128xf32>
    %42 = math.exp %41 : vector<8x128xf32>
    %cst_26 = arith.constant 1.000000e+00 : f32
    %43 = vector.broadcast %cst_26 : f32 to vector<8x128xf32>
    %44 = arith.addf %43, %42 : vector<8x128xf32>
    %45 = arith.divf %43, %44 : vector<8x128xf32>
    %46 = arith.mulf %40, %45 : vector<8x128xf32>
    %47 = arith.truncf %46 : vector<8x128xf32> to vector<8x128xbf16>
    %c0_27 = arith.constant 0 : index
    %c0_28 = arith.constant 0 : index
    %48 = vector.load %arg10[%c0_27, %c0_28] : memref<128x128xbf16, #tpu.memory_space<vmem>>, vector<128x128xbf16>
    %cst_29 = arith.constant dense<0.000000e+00> : vector<8x128xf32>
    %49 = tpu.matmul %47, %48, %cst_29 {dimension_numbers = #tpu.dot_dimension_numbers<[1], [0], [0], [1], [0, 0, 1, 1], [], []>} : vector<8x128xbf16>, vector<128x128xbf16>, vector<8x128xf32> -> vector<8x128xf32>
    %c0_30 = arith.constant 0 : index
    %c0_31 = arith.constant 0 : index
    %50 = vector.load %arg11[%c0_30, %c0_31] : memref<1x128xf32, #tpu.memory_space<vmem>>, vector<1x128xf32>
    %51 = vector.broadcast %50 : vector<1x128xf32> to vector<8x128xf32>
    %52 = arith.addf %49, %51 : vector<8x128xf32>
    %c0_32 = arith.constant 0 : index
    %c0_33 = arith.constant 0 : index
    %53 = vector.load %arg12[%c0_32, %c0_33] : memref<1x128xf32, #tpu.memory_space<vmem>>, vector<1x128xf32>
    %c0_34 = arith.constant 0 : index
    %c0_35 = arith.constant 0 : index
    %54 = vector.load %arg13[%c0_34, %c0_35] : memref<1x128xf32, #tpu.memory_space<vmem>>, vector<1x128xf32>
    %cst_36 = arith.constant dense<0.000000e+00> : vector<8xf32>
    %55 = vector.multi_reduction <add>, %52, %cst_36 [1] : vector<8x128xf32> to vector<8xf32>
    %56 = vector.shape_cast %55 : vector<8xf32> to vector<8x1xf32>
    %cst_37 = arith.constant 1.280000e+02 : f32
    %57 = vector.broadcast %cst_37 : f32 to vector<8x1xf32>
    %58 = arith.divf %56, %57 : vector<8x1xf32>
    %59 = arith.mulf %52, %52 : vector<8x128xf32>
    %cst_38 = arith.constant dense<0.000000e+00> : vector<8xf32>
    %60 = vector.multi_reduction <add>, %59, %cst_38 [1] : vector<8x128xf32> to vector<8xf32>
    %61 = vector.shape_cast %60 : vector<8xf32> to vector<8x1xf32>
    %cst_39 = arith.constant 1.280000e+02 : f32
    %62 = vector.broadcast %cst_39 : f32 to vector<8x1xf32>
    %63 = arith.divf %61, %62 : vector<8x1xf32>
    %64 = arith.mulf %58, %58 : vector<8x1xf32>
    %65 = arith.subf %63, %64 : vector<8x1xf32>
    %cst_40 = arith.constant 9.99999974E-6 : f32
    %66 = vector.broadcast %cst_40 : f32 to vector<8x1xf32>
    %67 = arith.addf %65, %66 : vector<8x1xf32>
    %68 = math.rsqrt %67 : vector<8x1xf32>
    %69 = vector.broadcast %58 : vector<8x1xf32> to vector<8x128xf32>
    %70 = arith.subf %52, %69 : vector<8x128xf32>
    %71 = vector.broadcast %68 : vector<8x1xf32> to vector<8x128xf32>
    %72 = arith.mulf %70, %71 : vector<8x128xf32>
    %73 = vector.broadcast %53 : vector<1x128xf32> to vector<8x128xf32>
    %74 = arith.mulf %72, %73 : vector<8x128xf32>
    %75 = vector.broadcast %54 : vector<1x128xf32> to vector<8x128xf32>
    %76 = arith.addf %74, %75 : vector<8x128xf32>
    %77 = arith.negf %76 : vector<8x128xf32>
    %78 = math.exp %77 : vector<8x128xf32>
    %cst_41 = arith.constant 1.000000e+00 : f32
    %79 = vector.broadcast %cst_41 : f32 to vector<8x128xf32>
    %80 = arith.addf %79, %78 : vector<8x128xf32>
    %81 = arith.divf %79, %80 : vector<8x128xf32>
    %82 = arith.mulf %76, %81 : vector<8x128xf32>
    %83 = arith.truncf %82 : vector<8x128xf32> to vector<8x128xbf16>
    %c0_42 = arith.constant 0 : index
    %c0_43 = arith.constant 0 : index
    %84 = vector.load %arg14[%c0_42, %c0_43] : memref<128x128xbf16, #tpu.memory_space<vmem>>, vector<128x128xbf16>
    %cst_44 = arith.constant dense<0.000000e+00> : vector<8x128xf32>
    %85 = tpu.matmul %83, %84, %cst_44 {dimension_numbers = #tpu.dot_dimension_numbers<[1], [0], [0], [1], [0, 0, 1, 1], [], []>} : vector<8x128xbf16>, vector<128x128xbf16>, vector<8x128xf32> -> vector<8x128xf32>
    %c0_45 = arith.constant 0 : index
    %c0_46 = arith.constant 0 : index
    %86 = vector.load %arg15[%c0_45, %c0_46] : memref<1x128xf32, #tpu.memory_space<vmem>>, vector<1x128xf32>
    %87 = vector.broadcast %86 : vector<1x128xf32> to vector<8x128xf32>
    %88 = arith.addf %85, %87 : vector<8x128xf32>
    %c0_47 = arith.constant 0 : index
    %c0_48 = arith.constant 0 : index
    %89 = vector.load %arg17[%c0_47, %c0_48] : memref<8x128xf32, #tpu.memory_space<vmem>>, vector<8x128xf32>
    tpu.vector_store %arg17[%c0_47, %c0_48], %88 {strides = array<i32>} : memref<8x128xf32, #tpu.memory_space<vmem>>, vector<8x128xf32>,
    return
  }
  func.func @transform_0(%arg0: i32) -> (i32, i32) {
    %c0_i32 = arith.constant 0 : i32
    %c0_i32_0 = arith.constant 0 : i32
    return %arg0, %c0_i32 : i32, i32
  }
  func.func @transform_1(%arg0: i32) -> (i32, i32) {
    %c0_i32 = arith.constant 0 : i32
    %c0_i32_0 = arith.constant 0 : i32
    return %arg0, %c0_i32 : i32, i32
  }
  func.func @transform_2(%arg0: i32) -> (i32, i32) {
    %c0_i32 = arith.constant 0 : i32
    %c0_i32_0 = arith.constant 0 : i32
    %c0_i32_1 = arith.constant 0 : i32
    return %c0_i32, %c0_i32_0 : i32, i32
  }
  func.func @transform_3(%arg0: i32) -> (i32, i32) {
    %c0_i32 = arith.constant 0 : i32
    %c0_i32_0 = arith.constant 0 : i32
    %c0_i32_1 = arith.constant 0 : i32
    return %c0_i32, %c0_i32_0 : i32, i32
  }
  func.func @transform_4(%arg0: i32) -> (i32, i32) {
    %c0_i32 = arith.constant 0 : i32
    %c0_i32_0 = arith.constant 0 : i32
    %c0_i32_1 = arith.constant 0 : i32
    return %c0_i32, %c0_i32_0 : i32, i32
  }
  func.func @transform_5(%arg0: i32) -> (i32, i32) {
    %c0_i32 = arith.constant 0 : i32
    %c0_i32_0 = arith.constant 0 : i32
    %c0_i32_1 = arith.constant 0 : i32
    return %c0_i32, %c0_i32_0 : i32, i32
  }
  func.func @transform_6(%arg0: i32) -> (i32, i32) {
    %c0_i32 = arith.constant 0 : i32
    %c0_i32_0 = arith.constant 0 : i32
    %c0_i32_1 = arith.constant 0 : i32
    return %c0_i32, %c0_i32_0 : i32, i32
  }
  func.func @transform_7(%arg0: i32) -> (i32, i32) {
    %c0_i32 = arith.constant 0 : i32
    %c0_i32_0 = arith.constant 0 : i32
    %c0_i32_1 = arith.constant 0 : i32
    return %c0_i32, %c0_i32_0 : i32, i32
  }
  func.func @transform_8(%arg0: i32) -> (i32, i32) {
    %c0_i32 = arith.constant 0 : i32
    %c0_i32_0 = arith.constant 0 : i32
    %c0_i32_1 = arith.constant 0 : i32
    return %c0_i32, %c0_i32_0 : i32, i32
  }
  func.func @transform_9(%arg0: i32) -> (i32, i32) {
    %c0_i32 = arith.constant 0 : i32
    %c0_i32_0 = arith.constant 0 : i32
    %c0_i32_1 = arith.constant 0 : i32
    return %c0_i32, %c0_i32_0 : i32, i32
  }
  func.func @transform_10(%arg0: i32) -> (i32, i32) {
    %c0_i32 = arith.constant 0 : i32
    %c0_i32_0 = arith.constant 0 : i32
    %c0_i32_1 = arith.constant 0 : i32
    return %c0_i32, %c0_i32_0 : i32, i32
  }
  func.func @transform_11(%arg0: i32) -> (i32, i32) {
    %c0_i32 = arith.constant 0 : i32
    %c0_i32_0 = arith.constant 0 : i32
    %c0_i32_1 = arith.constant 0 : i32
    return %c0_i32, %c0_i32_0 : i32, i32
  }
  func.func @transform_12(%arg0: i32) -> (i32, i32) {
    %c0_i32 = arith.constant 0 : i32
    %c0_i32_0 = arith.constant 0 : i32
    %c0_i32_1 = arith.constant 0 : i32
    return %c0_i32, %c0_i32_0 : i32, i32
  }
  func.func @transform_13(%arg0: i32) -> (i32, i32) {
    %c0_i32 = arith.constant 0 : i32
    %c0_i32_0 = arith.constant 0 : i32
    %c0_i32_1 = arith.constant 0 : i32
    return %c0_i32, %c0_i32_0 : i32, i32
  }
  func.func @transform_14(%arg0: i32) -> (i32, i32) {
    %c0_i32 = arith.constant 0 : i32
    %c0_i32_0 = arith.constant 0 : i32
    %c0_i32_1 = arith.constant 0 : i32
    return %c0_i32, %c0_i32_0 : i32, i32
  }
  func.func @transform_15(%arg0: i32) -> (i32, i32) {
    %c0_i32 = arith.constant 0 : i32
    %c0_i32_0 = arith.constant 0 : i32
    return %arg0, %c0_i32 : i32, i32
  }
  func.func @transform_16(%arg0: i32) -> (i32, i32) {
    %c0_i32 = arith.constant 0 : i32
    %c0_i32_0 = arith.constant 0 : i32
    return %arg0, %c0_i32 : i32, i32
  }
}

</mosaic_0001>

<bundles_post_ra>
// kernel: multitask_moco_forward.1
= control target key start
LH: loop header
LB: loop body
LE: loop exit
PB: predicated region body
PF: predicated region fallthrough
CT: control target
= control target key end

     0   :  { %s1400_s0 = inlined_call_operand.vmem [shape: bf16[8,256], index: 0, kind: input, shape index: {}]   ;;  %s1401_s1 = inlined_call_operand.vmem [shape: bf16[8,128], index: 1, kind: input, shape index: {}]   ;;  %s1402_s2 = inlined_call_operand.vmem [shape: bf16[256,128], index: 2, kind: input, shape index: {}]   ;;  %s1403_s3 = inlined_call_operand.vmem [shape: bf16[128,128], index: 3, kind: input, shape index: {}]   ;;  %s1404_s4 = inlined_call_operand.vmem [shape: f32[1,128], index: 4, kind: input, shape index: {}]   ;;  %s1405_s5 = inlined_call_operand.vmem [shape: bf16[128,128], index: 5, kind: input, shape index: {}]   ;;  %s1406_s6 = inlined_call_operand.vmem [shape: f32[1,128], index: 6, kind: input, shape index: {}]   ;;  %s1407_s7 = inlined_call_operand.vmem [shape: f32[1,128], index: 7, kind: input, shape index: {}]   ;;  %s1408_s8 = inlined_call_operand.vmem [shape: f32[1,128], index: 8, kind: input, shape index: {}]   ;;  %s1409_s9 = inlined_call_operand.vmem [shape: bf16[128,128], index: 9, kind: input, shape index: {}]   ;;  %s1410_s10 = inlined_call_operand.vmem [shape: f32[1,128], index: 10, kind: input, shape index: {}]   ;;  %s1411_s11 = inlined_call_operand.vmem [shape: f32[1,128], index: 11, kind: input, shape index: {}]   ;;  %s1412_s12 = inlined_call_operand.vmem [shape: f32[1,128], index: 12, kind: input, shape index: {}]   ;;  %s1413_s13 = inlined_call_operand.vmem [shape: bf16[128,128], index: 13, kind: input, shape index: {}]   ;;  %s1414_s14 = inlined_call_operand.vmem [shape: f32[1,128], index: 14, kind: input, shape index: {}]   ;;  %s1415_s15 = inlined_call_operand.hbm [shape: f32[8,128], index: 15, kind: output, shape index: {0}]   ;;  %s1416_s16 = inlined_call_operand.hbm [shape: f32[8,128], index: 16, kind: output, shape index: {1}]  }
   0x1   :  { %1417 = sst [smem:[#allocation8_spill]] %s1400_s0 }
   0x2   :  { %22 = vsyncpa [#allocation3], 0  ;;  %v985_v0 = vld [vmem:[%s1403_s3 + $0x38] sm:$0xff]   ;;  %v1091_v1 = vmov 0.0   ;;  %vm1092_vm0 = vmmov 0   ;;  %v988_v4 = vld [vmem:[%s1403_s3 + $0x30] sm:$0xff]  }
   0x3   :  { %901 = vmatprep.subr.bf16.mxu0 %v1091_v1  ;;  %v986_v2 = vld [vmem:[%s1402_s2 + $0x78] sm:$0xff]   ;;  %917 = vmatprep.mubr.msk.bf16.mxu0 %vm1092_vm0, %v1091_v1  ;;  %v989_v5 = vld [vmem:[%s1402_s2 + $0x70] sm:$0xff]   ;;  %v991_v7 = vld [vmem:[%s1403_s3 + $0x28] sm:$0xff]   ;;  %s1418_s20 = sld [smem:[#allocation8_spill]] }
   0x4   :  { %902 = vmatpush3.bf16.msra.mxu0 %v985_v0  ;;  %v987_v3 = vld [vmem:[%s1402_s2 + $0x38] sm:$0xff]   ;;  %852 = vmatprep.subr.bf16.mxu1 %v986_v2  ;;  %v990_v6 = vld [vmem:[%s1402_s2 + $0x30] sm:$0xff]   ;;  %v992_v8 = vld [vmem:[%s1402_s2 + $0x68] sm:$0xff]  }
   0x5   :  { %903 = vmatprep.subr.bf16.mxu0 %v1091_v1  ;;  %853 = vmatpush3.bf16.msra.mxu1 %v987_v3  ;;  %v993_v9 = vld [vmem:[%s1402_s2 + $0x28] sm:$0xff]   ;;  %v994_v10 = vld [vmem:[%s1403_s3 + $0x20] sm:$0xff]   ;;  %v998_v13 = vld [vmem:[%s1402_s2 + $0x58] sm:$0xff]  }
   0x6   :  { %854 = vmatprep.subr.bf16.mxu1 %v989_v5  ;;  %v995_v11 = vld [vmem:[%s1402_s2 + $0x60] sm:$0xff]   ;;  %v997_v14 = vld [vmem:[%s1403_s3 + $0x18] sm:$0xff]   ;;  %v1001_v16 = vld [vmem:[%s1402_s2 + $0x50] sm:$0xff]  }
   0x7   :  { %v996_v12 = vld [vmem:[%s1402_s2 + $0x20] sm:$0xff]   ;;  %v999_v15 = vld [vmem:[%s1402_s2 + $0x18] sm:$0xff]   ;;  %v1000_v17 = vld [vmem:[%s1403_s3 + $0x10] sm:$0xff]  }
   0x8   :  { %904 = vmatpush3.bf16.msra.mxu0 %v988_v4  ;;  %v1002_v18 = vld [vmem:[%s1402_s2 + $0x10] sm:$0xff]   ;;  %v1004_v19 = vld [vmem:[%s1402_s2 + $0x48] sm:$0xff]   ;;  %v1007_v23 = vld [vmem:[%s1402_s2 + $0x40] sm:$0xff]  }
   0x9   :  { %905 = vmatprep.subr.bf16.mxu0 %v1091_v1  ;;  %855 = vmatpush3.bf16.msra.mxu1 %v990_v6  ;;  %v1003_v20 = vld [vmem:[%s1403_s3 + $0x8] sm:$0xff]   ;;  %v55_v22 = vld [vmem:[%s1418_s20] sm:$0xff]  ;;  %v1011_v28 = vld [vmem:[%s1405_s5 + $0x38] sm:$0xff]  }
   0xa   :  { %856 = vmatprep.subr.bf16.mxu1 %v992_v8  ;;  %v1005_v21 = vld [vmem:[%s1402_s2 + $0x8] sm:$0xff]   ;;  %v792_v24 = vcombine.high %v55_v22, %v55_v22  ;;  %v1006_v25 = vld [vmem:[%s1403_s3] sm:$0xff]   ;;  %v791_v29 = vcombine.low %v55_v22, %v55_v22  ;;  %v1012_v30 = vld [vmem:[%s1405_s5 + $0x30] sm:$0xff]  }
   0xb   :  { %v1008_v26 = vld [vmem:[%s1402_s2] sm:$0xff]   ;;  %v1013_v31 = vld [vmem:[%s1405_s5 + $0x28] sm:$0xff]  }
   0xc   :  { %906 = vmatpush3.bf16.msra.mxu0 %v991_v7  ;;  %328 = vmatprep.mubr.bf16.mxu1 %v792_v24  ;;  %v88_v27 = vld [vmem:[%s1401_s1] sm:$0xf] }
   0xd   :  { %907 = vmatprep.subr.bf16.mxu0 %v1091_v1  ;;  %857 = vmatpush3.bf16.msra.mxu1 %v993_v9  ;;  %v1014_v32 = vld [vmem:[%s1405_s5 + $0x20] sm:$0xff]  }
   0xe   :  { %858 = vmatprep.subr.bf16.mxu1 %v995_v11 }
  0x10   :  { %908 = vmatpush3.bf16.msra.mxu0 %v994_v10 }
  0x11   :  { %909 = vmatprep.subr.bf16.mxu0 %v1091_v1  ;;  %859 = vmatpush3.bf16.msra.mxu1 %v996_v12 }
  0x12   :  { %860 = vmatprep.subr.bf16.mxu1 %v998_v13 }
  0x14   :  { %910 = vmatpush3.bf16.msra.mxu0 %v997_v14 }
  0x15   :  { %911 = vmatprep.subr.bf16.mxu0 %v1091_v1  ;;  %861 = vmatpush3.bf16.msra.mxu1 %v999_v15 }
  0x16   :  { %862 = vmatprep.subr.bf16.mxu1 %v1001_v16 }
  0x18   :  { %912 = vmatpush3.bf16.msra.mxu0 %v1000_v17 }
  0x19   :  { %913 = vmatprep.subr.bf16.mxu0 %v1091_v1  ;;  %863 = vmatpush3.bf16.msra.mxu1 %v1002_v18 }
  0x1a   :  { %864 = vmatprep.subr.bf16.mxu1 %v1004_v19 }
  0x1c   :  { %914 = vmatpush3.bf16.msra.mxu0 %v1003_v20 }
  0x1d   :  { %915 = vmatprep.subr.bf16.mxu0 %v1091_v1  ;;  %865 = vmatpush3.bf16.msra.mxu1 %v1005_v21 }
  0x1e   :  { %866 = vmatprep.subr.bf16.mxu1 %v1007_v23 }
  0x20   :  { %916 = vmatpush3.bf16.msra.mxu0 %v1006_v25 }
  0x21   :  { %921 = vmatprep.subr.bf16.mxu0 %v1091_v1  ;;  %867 = vmatpush3.bf16.msra.mxu1 %v1008_v26 }
  0x22   :  { %941 = vmatprep.subr.bf16.mxu1 %v1091_v1 }
  0x23   :  { %918 = vmatmul.mubr.bf16.vlgmr.msra.gmra.mxu0 %v88_v27 }
  0x24   :  { %922 = vmatpush3.bf16.msra.mxu0 %v1011_v28  ;;  %937 = vmatprep.mubr.msk.bf16.mxu0 %vm1092_vm0, %v1091_v1 }
  0x25   :  { %329 = vmatmul.mubr.bf16.vlgmr.msra.gmra.mxu1 %v791_v29  ;;  %923 = vmatprep.subr.bf16.mxu0 %v1091_v1 }
  0x26   :  { %957 = vmatprep.mubr.msk.bf16.mxu1 %vm1092_vm0, %v1091_v1 }
  0x28   :  { %924 = vmatpush3.bf16.msra.mxu0 %v1012_v30 }
  0x29   :  { %925 = vmatprep.subr.bf16.mxu0 %v1091_v1 }
  0x2c   :  { %926 = vmatpush3.bf16.msra.mxu0 %v1013_v31 }
  0x2d   :  { %23 = vsyncpa [#allocation5], 0  ;;  %927 = vmatprep.subr.bf16.mxu0 %v1091_v1  ;;  %v1015_v33 = vld [vmem:[%s1405_s5 + $0x18] sm:$0xff]   ;;  %v1016_v34 = vld [vmem:[%s1405_s5 + $0x10] sm:$0xff]   ;;  %s1093_s26 = smov [#allocation2]  }
  0x2e   :  { %v1017_v35 = vld [vmem:[%s1405_s5 + $0x8] sm:$0xff]   ;;  %v1018_v36 = vld [vmem:[%s1405_s5] sm:$0xff]   ;;  %v1019_v57 = vld [vmem:[%s1409_s9 + $0x38] sm:$0xff]   ;;  %s761_s27 = sshll.u32 %s1093_s26, 4  ;;  %s762_s27 = int_to_ptr.vmem [resolvable:$true] %s761_s27 }
  0x2f   :  { %v809_v43 = vld [vmem:[%s1404_s4] ss:$0 sm:$0xff]  ;;  %942 = vmatpush3.bf16.msra.mxu1 %v1019_v57  ;;  %v1020_v58 = vld [vmem:[%s1409_s9 + $0x30] sm:$0xff]   ;;  %v1021_v59 = vld [vmem:[%s1409_s9 + $0x28] sm:$0xff]   ;;  %p1052_p1 = scmp.lt.s32.totalorder %s762_s27, %s762_s27 }
  0x30   :  { %928 = vmatpush3.bf16.msra.mxu0 %v1014_v32  ;;  %v810_v50 = vld [vmem:[%s1406_s6] ss:$0 sm:$0xff]  ;;  %943 = vmatprep.subr.bf16.mxu1 %v1091_v1  ;;  %v1023_v61 = vld [vmem:[%s1409_s9 + $0x18] sm:$0xff]   ;;  %v1024_v62 = vld [vmem:[%s1409_s9 + $0x10] sm:$0xff]  }
  0x31   :  { %929 = vmatprep.subr.bf16.mxu0 %v1091_v1  ;;  %v1022_v60 = vld [vmem:[%s1409_s9 + $0x20] sm:$0xff]   ;;  %v1025_v63 = vld [vmem:[%s1409_s9 + $0x8] sm:$0xff]   ;;  %v1027_v29 = vld [vmem:[%s1413_s13 + $0x38] sm:$0xff]  }
  0x32   :  { %v1026_v0 = vld [vmem:[%s1409_s9] sm:$0xff]   ;;  %v1028_v30 = vld [vmem:[%s1413_s13 + $0x30] sm:$0xff]   ;;  %v1029_v31 = vld [vmem:[%s1413_s13 + $0x28] sm:$0xff]  }
  0x33   :  { %944 = vmatpush3.bf16.msra.mxu1 %v1020_v58  ;;  %v819_v11 = vld [vmem:[%s1407_s7] ss:$0 sm:$0xff] }
  0x34   :  { %930 = vmatpush3.bf16.msra.mxu0 %v1015_v33  ;;  %945 = vmatprep.subr.bf16.mxu1 %v1091_v1  ;;  %v820_v13 = vld [vmem:[%s1408_s8] ss:$0 sm:$0xff]  ;;  %v1031_v33 = vld [vmem:[%s1413_s13 + $0x18] sm:$0xff]  }
  0x35   :  { %931 = vmatprep.subr.bf16.mxu0 %v1091_v1  ;;  %v822_v22 = vld [vmem:[%s1410_s10] ss:$0 sm:$0xff] }
  0x36   :  { %v1030_v32 = vld [vmem:[%s1413_s13 + $0x20] sm:$0xff]  }
  0x37   :  { %946 = vmatpush3.bf16.msra.mxu1 %v1021_v59 }
  0x38   :  { %932 = vmatpush3.bf16.msra.mxu0 %v1016_v34  ;;  %947 = vmatprep.subr.bf16.mxu1 %v1091_v1  ;;  %v1032_v34 = vld [vmem:[%s1413_s13 + $0x10] sm:$0xff]  }
  0x39   :  { %933 = vmatprep.subr.bf16.mxu0 %v1091_v1 }
  0x3b   :  { %948 = vmatpush3.bf16.msra.mxu1 %v1022_v60 }
  0x3c   :  { %934 = vmatpush3.bf16.msra.mxu0 %v1017_v35  ;;  %949 = vmatprep.subr.bf16.mxu1 %v1091_v1  ;;  %v1033_v35 = vld [vmem:[%s1413_s13 + $0x8] sm:$0xff]  }
  0x3d   :  { %935 = vmatprep.subr.bf16.mxu0 %v1091_v1 }
  0x3f   :  { %950 = vmatpush3.bf16.msra.mxu1 %v1023_v61 }
  0x40   :  { %936 = vmatpush3.bf16.msra.mxu0 %v1018_v36  ;;  %951 = vmatprep.subr.bf16.mxu1 %v1091_v1  ;;  %v1034_v36 = vld [vmem:[%s1413_s13] sm:$0xff]  }
  0x41   :  { %961 = vmatprep.subr.bf16.mxu0 %v1091_v1 }
  0x43   :  { %952 = vmatpush3.bf16.msra.mxu1 %v1024_v62 }
  0x44   :  { %953 = vmatprep.subr.bf16.mxu1 %v1091_v1 }
  0x47   :  { %954 = vmatpush3.bf16.msra.mxu1 %v1025_v63 }
  0x48   :  { %955 = vmatprep.subr.bf16.mxu1 %v1091_v1 }
  0x4b   :  { %956 = vmatpush3.bf16.msra.mxu1 %v1026_v0 }
  0xe3   :  { %v187_v37 = vpop.f32.mrf.mxu0 }
  0xe5   :  { %v868_v38 = vpop.f32.mrf.mxu1  ;;  %v919_v39 = vpop.f32.mrf.mxu0 }
  0xe7   :  { %v869_v40 = vpop.f32.mrf.mxu1  ;;  %v190_v41 = vpop.f32.mrf.mxu0 }
  0xe8   :  { %v870_v42 = vadd.f32 %v869_v40, %v868_v38 }
  0xe9   :  { %v871_v44 = vpop.f32.mrf.mxu1  ;;  %v920_v45 = vpop.f32.mrf.mxu0 }
  0xea   :  { %v331_v46 = vadd.f32 %v870_v42, %v187_v37 }
  0xeb   :  { %v872_v47 = vpop.f32.mrf.mxu1 }
  0xec   :  { %v343_v48 = vadd.f32 %v809_v43, %v331_v46  ;;  %v831_v46 = vld [vmem:[%s1411_s11] ss:$0 sm:$0xff]  ;;  %s1047_s11 = scalar_lea.vmem %s762_s27, 128 }
  0xed   :  { %p1048_p0 = scmp.ne.s32.totalorder %s762_s27, %s1047_s11  ;;  %p1053_p2 = scmp.lt.s32.totalorder %s1047_s11, %s1047_s11 }
  0xee   :  { %v345_v49 = vpack.c.bf16 %v343_v48, %v343_v48  ;;  %344 = vst [vmem:[#allocation2] sm:$0xff] %v343_v48 }
  0xef   :  { %p1054_p3 = por %p1053_p2, %p1052_p1 }
  0xf0   :  { %938 = vmatmul.mubr.bf16.vlgmr.msra.gmra.mxu0 %v345_v49 }
  0xf1   :  { %977 = vmatprep.mubr.msk.bf16.mxu0 %vm1092_vm0, %v1091_v1  ;;  %962 = vmatpush3.bf16.msra.mxu0 %v1027_v29  ;;  %p1055_p4 = pnand %p1054_p3, %p1048_p0 }
  0xf2   :  { %963 = vmatprep.subr.bf16.mxu0 %v1091_v1 }
  0xf5   :  { %964 = vmatpush3.bf16.msra.mxu0 %v1028_v30 }
  0xf6   :  { %965 = vmatprep.subr.bf16.mxu0 %v1091_v1 }
  0xf9   :  { %966 = vmatpush3.bf16.msra.mxu0 %v1029_v31 }
  0xfa   :  { %967 = vmatprep.subr.bf16.mxu0 %v1091_v1 }
  0xfd   :  { %968 = vmatpush3.bf16.msra.mxu0 %v1030_v32 }
  0xfe   :  { %969 = vmatprep.subr.bf16.mxu0 %v1091_v1 }
 0x101   :  { %970 = vmatpush3.bf16.msra.mxu0 %v1031_v33 }
 0x102   :  { %971 = vmatprep.subr.bf16.mxu0 %v1091_v1 }
 0x105   :  { %972 = vmatpush3.bf16.msra.mxu0 %v1032_v34 }
 0x106   :  { %973 = vmatprep.subr.bf16.mxu0 %v1091_v1 }
 0x109   :  { %974 = vmatpush3.bf16.msra.mxu0 %v1033_v35 }
 0x10a   :  { %975 = vmatprep.subr.bf16.mxu0 %v1091_v1  ;;  %v832_v1 = vld [vmem:[%s1412_s12] ss:$0 sm:$0xff] }
 0x10d   :  { %976 = vmatpush3.bf16.msra.mxu0 %v1034_v36 }
 0x1b0   :  { %v451_v51 = vpop.f32.mrf.mxu0 }
 0x1b1   :  { %v452_v52 = vadd.f32 %v810_v50, %v451_v51 }
 0x1b2   :  { %v939_v53 = vpop.f32.mrf.mxu0 }
 0x1b3   :  { %459 = vadd.xlane.f32.xlu0 %v452_v52  ;;  %v463_v55 = vmul.f32 %v452_v52, %v452_v52 }
 0x1b4   :  { %v454_v54 = vpop.f32.mrf.mxu0 }
 0x1b6   :  { %v940_v56 = vpop.f32.mrf.mxu0 }
 0x1b7   :  { %464 = vadd.xlane.f32.xlu0 %v463_v55 }
 0x23c   :  { %v460_v2 = vpop.xlane.xlu0 %459 }
 0x23d   :  { %v462_v3 = vmul.f32 0.0078125, %v460_v2 }
 0x23f   :  { %v467_v5 = vmul.f32 %v462_v3, %v462_v3  ;;  %v471_v9 = vsub.f32 %v452_v52, %v462_v3 }
 0x240   :  { %v465_v4 = vpop.xlane.xlu0 %464 }
 0x241   :  { %v466_v6 = vmul.f32 0.0078125, %v465_v4 }
 0x243   :  { %v468_v7 = vsub.f32 %v466_v6, %v467_v5 }
 0x245   :  { %v469_v8 = vadd.f32 1e-05, %v468_v7 }
 0x247   :  { %1035 = vrsqrt.f32 %v469_v8 }
 0x254   :  { %v1036_v10 = vpop.eup %1035 }
 0x255   :  { %v472_v12 = vmul.f32 %v1036_v10, %v471_v9 }
 0x257   :  { %v479_v14 = vmul.f32 %v819_v11, %v472_v12 }
 0x259   :  { %v486_v15 = vadd.f32 %v820_v13, %v479_v14 }
 0x25b   :  { %v821_v16 = vmul.f32 -1.442695, %v486_v15 }
 0x25d   :  { %1037 = vpow2.f32 %v821_v16 }
 0x26a   :  { %v1038_v17 = vpop.eup %1037 }
 0x26b   :  { %v490_v18 = vadd.f32 1.0, %v1038_v17 }
 0x26d   :  { %1039 = vrcp.f32 %v490_v18 }
 0x27a   :  { %v1040_v19 = vpop.eup %1039 }
 0x27b   :  { %v493_v20 = vmul.f32 %v1040_v19, %v486_v15 }
 0x27d   :  { %v494_v21 = vpack.c.bf16 %v493_v20, %v493_v20 }
 0x27f   :  { %958 = vmatmul.mubr.bf16.vlgmr.msra.gmra.mxu1 %v494_v21 }
 0x33f   :  { %v600_v23 = vpop.f32.mrf.mxu1 }
 0x340   :  { %v601_v24 = vadd.f32 %v822_v22, %v600_v23 }
 0x341   :  { %v959_v25 = vpop.f32.mrf.mxu1 }
 0x342   :  { %608 = vadd.xlane.f32.xlu1 %v601_v24  ;;  %v611_v27 = vmul.f32 %v601_v24, %v601_v24 }
 0x343   :  { %v603_v26 = vpop.f32.mrf.mxu1 }
 0x345   :  { %v960_v28 = vpop.f32.mrf.mxu1 }
 0x346   :  { %612 = vadd.xlane.f32.xlu1 %v611_v27 }
 0x3cb   :  { %v609_v37 = vpop.xlane.xlu1 %608 }
 0x3cc   :  { %v610_v38 = vmul.f32 0.0078125, %v609_v37 }
 0x3ce   :  { %v615_v40 = vmul.f32 %v610_v38, %v610_v38  ;;  %v619_v44 = vsub.f32 %v601_v24, %v610_v38 }
 0x3cf   :  { %v613_v39 = vpop.xlane.xlu1 %612 }
 0x3d0   :  { %v614_v41 = vmul.f32 0.0078125, %v613_v39 }
 0x3d2   :  { %v616_v42 = vsub.f32 %v614_v41, %v615_v40 }
 0x3d4   :  { %v617_v43 = vadd.f32 1e-05, %v616_v42 }
 0x3d6   :  { %1041 = vrsqrt.f32 %v617_v43 }
 0x3e3   :  { %v1042_v45 = vpop.eup %1041 }
 0x3e4   :  { %v620_v47 = vmul.f32 %v1042_v45, %v619_v44 }
 0x3e6   :  { %v627_v48 = vmul.f32 %v831_v46, %v620_v47 }
 0x3e8   :  { %v634_v49 = vadd.f32 %v832_v1, %v627_v48 }
 0x3ea   :  { %v833_v50 = vmul.f32 -1.442695, %v634_v49 }
 0x3ec   :  { %1043 = vpow2.f32 %v833_v50 }
 0x3f9   :  { %v1044_v51 = vpop.eup %1043 }
 0x3fa   :  { %v638_v52 = vadd.f32 1.0, %v1044_v51 }
 0x3fc   :  { %1045 = vrcp.f32 %v638_v52 }
 0x409   :  { %v1046_v53 = vpop.eup %1045 }
 0x40a   :  { %v641_v54 = vmul.f32 %v1046_v53, %v634_v49 }
 0x40c   :  { %v642_v55 = vpack.c.bf16 %v641_v54, %v641_v54 }
 0x40e   :  { %978 = vmatmul.mubr.bf16.vlgmr.msra.gmra.mxu0 %v642_v55 }
 0x40f   :  { %1058 = shalt.err (!%p1055_p4)
}
 0x410   :  { %764 = dma.vmem_to_hbm [thread:$0]  %s762_s27, 128, %s1415_s15, [#allocation3]   ;;  %v834_v56 = vld [vmem:[%s1414_s14] ss:$0 sm:$0xff] }
 0x411   :  { %s1094_s29 = smov [#allocation4]  }
 0x412   :  { %s771_s7 = sshll.u32 %s1094_s29, 4  ;;  %s772_s7 = int_to_ptr.vmem [resolvable:$true] %s771_s7 }
 0x413   :  { %s1067_s8 = scalar_lea.vmem %s772_s7, 128  ;;  %p1072_p6 = scmp.lt.s32.totalorder %s772_s7, %s772_s7 }
 0x414   :  { %p1068_p5 = scmp.ne.s32.totalorder %s772_s7, %s1067_s8  ;;  %p1073_p7 = scmp.lt.s32.totalorder %s1067_s8, %s1067_s8 }
 0x416   :  { %p1074_p8 = por %p1073_p7, %p1072_p6 }
 0x418   :  { %p1075_p9 = pnand %p1074_p8, %p1068_p5 }
 0x4ce   :  { %v748_v57 = vpop.f32.mrf.mxu0 }
 0x4cf   :  { %v749_v58 = vadd.f32 %v834_v56, %v748_v57 }
 0x4d0   :  { %v979_v59 = vpop.f32.mrf.mxu0 }
 0x4d1   :  { %754 = vst [vmem:[#allocation4] sm:$0xff] %v749_v58 }
 0x4d2   :  { %v751_v60 = vpop.f32.mrf.mxu0 }
 0x4d3   :  { %1078 = shalt.err (!%p1075_p9)
}
 0x4d4   :  { %774 = dma.vmem_to_hbm [thread:$0]  %s772_s7, 128, %s1416_s16, [#allocation5]   ;;  %v980_v61 = vpop.f32.mrf.mxu0 }
 0x4d5   :  { %1087 = dma.done.wait [#allocation3], 128  }
 0x4d6   :  { %1088 = vsyncadd [#allocation3], 4294967168 }
 0x4d7   :  { %1089 = dma.done.wait [#allocation5], 128  }
 0x4d8   :  { %1090 = vsyncadd [#allocation5], 4294967168 }
 0x4d9   :  { %781 = vsyncpa [#allocation3], 1 }
 0x4da   :  { %782 = vsyncpa [#allocation5], 1 }

</bundles_post_ra>
